<compile_context>
chip_gen: v5e
topology: v5e:2x2
jax: 0.10.0
libtpu: 0.0.40
codegen_flags: <defaults>
</compile_context>

<pallas_src>
import functools

import jax
import jax.numpy as jnp
from jax.experimental import pallas as pl
from jax.experimental.pallas import tpu as pltpu


def _round_up(a: int, m: int) -> int:
    return (a + m - 1) // m * m


# ---------------------------------------------------------------------------
# Kernels
# ---------------------------------------------------------------------------

def _layernorm_bf16(x_f32, *, eps, n_features, need_mask):
    """tharsis LayerNorm core: unbiased std (ddof=1), divide by (std + eps).

    gamma/beta are folded into the linear weights, so this returns just the
    normalized activations, cast to bf16 for the MXU.
    """
    if need_mask:
        lane = jax.lax.broadcasted_iota(jnp.int32, x_f32.shape, 1)
        mask = (lane < n_features).astype(jnp.float32)
    mean = jnp.sum(x_f32, axis=-1, keepdims=True) * (1.0 / n_features)
    diff = x_f32 - mean
    if need_mask:
        diff = diff * mask            # padded lanes must not pollute variance
    # ddof = 1 like torch.std; F == 1 is degenerate upstream too (torch -> NaN),
    # guard the compile-time constant so we never emit a divide-by-zero.
    var = jnp.sum(diff * diff, axis=-1, keepdims=True) * (1.0 / max(n_features - 1, 1))
    inv = pl.reciprocal(jnp.sqrt(var) + eps, approx=True)     # EUP slot (~free)
    return (diff * inv).astype(jnp.bfloat16)


def _short_connection_kernel_full(x_ref, wt_ref, b_ref, o_ref, *,
                                  eps, n_features, need_mask):
    """1-D grid path: full output width resident (tn == Fp)."""
    x = x_ref[...].astype(jnp.float32)                               # (TM, Fp)
    z = _layernorm_bf16(x, eps=eps, n_features=n_features, need_mask=need_mask)
    # folded sublayer: z @ (gamma*W^T) + (beta@W^T + b), bf16 in -> f32 acc
    y = jnp.dot(z, wt_ref[...], preferred_element_type=jnp.float32) + b_ref[...]
    # dropout (eval mode => identity) + residual connection in f32
    o_ref[...] = (x + y).astype(o_ref.dtype)


def _short_connection_kernel_tiled(x_ref, wt_ref, b_ref, o_ref, z_ref, *,
                                   eps, n_features, need_mask, tn):
    """2-D grid path (rows x out-cols): LayerNorm computed once per row tile
    (at j == 0), cached in bf16 scratch; per-j work is one MXU matmul."""
    j = pl.program_id(1)

    @pl.when(j == 0)
    def _():
        x = x_ref[...].astype(jnp.float32)
        z_ref[...] = _layernorm_bf16(x, eps=eps, n_features=n_features,
                                     need_mask=need_mask)

    y = jnp.dot(z_ref[...], wt_ref[...], preferred_element_type=jnp.float32)
    y = y + b_ref[...]

    # Residual slice straight out of the already-resident x tile (x block index
    # is constant over j, so it is not re-DMA'd) -- no second activation stream.
    col0 = pl.multiple_of(j * tn, 128)
    res = x_ref[:, pl.ds(col0, tn)].astype(jnp.float32)
    o_ref[...] = (res + y).astype(o_ref.dtype)


# ---------------------------------------------------------------------------
# Parameter folding (hoist out of the per-forward path!)
# ---------------------------------------------------------------------------

def fold_short_connection_params(gamma, beta, w, b):
    """Fold LayerNorm's affine into the Linear sublayer and pad to a lane-dense
    multiple of 128.  Exactly equivalent because the residual uses raw x:

        (gamma*z + beta) @ W^T + b == z @ (gamma[:,None]*W^T) + (beta@W^T + b)

    This is an O(F^2) HBM pass over the weights -- call ONCE at parameter-load
    time (or let jit constant-fold it), never per forward step.
    """
    F = w.shape[0]
    Fp = _round_up(F, 128)
    wt = jnp.transpose(w).astype(jnp.float32)                         # (F,F)=W^T
    b_folded = beta.astype(jnp.float32) @ wt + b.astype(jnp.float32)
    wt_folded = gamma.astype(jnp.float32)[:, None] * wt
    if Fp != F:
        wt_folded = jnp.pad(wt_folded, ((0, Fp - F), (0, Fp - F)))
        b_folded = jnp.pad(b_folded, (0, Fp - F))
    # bf16 operands into the MXU (f32 accumulation in-kernel); bias stays f32.
    return wt_folded.astype(jnp.bfloat16), b_folded.reshape(1, Fp).astype(jnp.float32)


# ---------------------------------------------------------------------------
# Tile / VMEM heuristics (generation-aware)
# ---------------------------------------------------------------------------

def _vmem_capacity_bytes() -> int:
    try:
        cap = getattr(pltpu.get_tpu_info(), "vmem_capacity_bytes", None)
        if cap:
            return int(cap)
    except Exception:
        pass
    return 64 << 20          # conservative fallback (v7x per-TC); v5e/v6e: 128 MiB


def _choose_tiles(rows, Fp, x_itemsize, out_itemsize,
                  block_rows, block_cols, vmem_cap):
    big_vmem = vmem_cap >= (96 << 20)              # v5e/v6e (128 MiB) vs v7x (64 MiB)

    # Output-column tiling only when the resident bf16 W^T slab is too big.
    w_bytes = Fp * Fp * 2
    w_thresh = (36 << 20) if big_vmem else (24 << 20)
    if block_cols is None:
        if w_bytes <= w_thresh:
            tn = Fp
        else:
            tn = 128
            for cand in (512, 384, 256, 128):      # largest 128-mult divisor of Fp
                if Fp % cand == 0:
                    tn = cand
                    break
    else:
        tn = min(block_cols, Fp)
        assert tn % 128 == 0 and Fp % tn == 0, \
            "block_cols must be a 128-multiple divisor of the padded feature dim"
    tiled = tn != Fp

    tm = block_rows if block_rows is not None else (512 if big_vmem else 256)
    tm = min(_round_up(tm, 8), _round_up(rows, 8))

    # Give v7x's two TensorCores at least two independent row tiles (neutral
    # on single-TC chips: per-step overhead is ~0.35 us).
    if block_rows is None and rows > 128 and pl.cdiv(rows, tm) < 2:
        tm = max(64, _round_up(pl.cdiv(rows, 2), 8))

    def est(tm_):
        x_buf = 2 * tm_ * Fp * x_itemsize              # double-buffered x tile
        o_buf = 2 * tm_ * tn * out_itemsize            # double-buffered out tile
        if tiled:
            w_buf = 2 * (Fp * tn * 2 + tn * 4)         # streamed weight/bias tiles
            z_buf = tm_ * Fp * 2                       # bf16 LayerNorm cache
        else:
            w_buf = Fp * tn * 2 + tn * 4               # single-buffered resident slab
            z_buf = 0
        return x_buf + o_buf + w_buf + z_buf

    budget = vmem_cap * 3 // 4                          # ~96 MiB / ~48 MiB
    while tm > 64 and est(tm) > budget:
        tm = _round_up(tm // 2, 8)

    return tm, tn, tiled, est(tm)


# ---------------------------------------------------------------------------
# Forward wrapper
# ---------------------------------------------------------------------------

def short_connection_layer(x, wt_folded, b_folded, *, n_features, eps=1e-6,
                           block_rows=None, block_cols=None):
    """x: (..., F).  wt_folded (Fp,Fp) bf16 / b_folded (1,Fp) f32 come from
    fold_short_connection_params().  Output dtype == x.dtype (bf16 activations
    pass straight through; stats stay f32 inside the kernel)."""
    F = n_features
    Fp = wt_folded.shape[0]
    orig_shape = x.shape
    rows = 1
    for d in orig_shape[:-1]:
        rows *= d
    x2 = x.reshape(rows, F)

    # Lane padding only when F is not a 128-multiple (pays one copy); rows are
    # never padded -- cdiv grid, Pallas drops out-of-bounds writes of the last
    # (partial) row block and per-row math keeps valid rows independent.
    need_mask = (Fp != F)
    if need_mask:
        x2 = jnp.pad(x2, ((0, 0), (0, Fp - F)))

    out_dtype = x.dtype
    x_itemsize = x2.dtype.itemsize
    out_itemsize = jnp.dtype(out_dtype).itemsize
    vmem_cap = _vmem_capacity_bytes()
    tm, tn, tiled, est = _choose_tiles(rows, Fp, x_itemsize, out_itemsize,
                                       block_rows, block_cols, vmem_cap)
    num_i = pl.cdiv(rows, tm)
    n_j = Fp // tn
    vmem_limit = int(min(vmem_cap, max(32 << 20, est + est // 4 + (2 << 20))))

    cost = pl.CostEstimate(
        flops=int(2 * rows * Fp * Fp),
        transcendentals=int(2 * rows),                     # sqrt + recip per row
        bytes_accessed=int(rows * Fp * x_itemsize          # x read (once)
                           + rows * Fp * out_itemsize      # output write
                           + Fp * Fp * 2 * (num_i if tiled else 1)   # weights
                           + Fp * 4),                      # bias
    )
    compiler_params_1d = pltpu.CompilerParams(
        dimension_semantics=("parallel",), vmem_limit_bytes=vmem_limit)
    compiler_params_2d = pltpu.CompilerParams(
        # j must run sequentially per row tile (bf16 z-scratch reuse); the row
        # axis stays parallel so v7x's two TensorCores split independent work.
        dimension_semantics=("parallel", "arbitrary"), vmem_limit_bytes=vmem_limit)
    out_shape = jax.ShapeDtypeStruct((rows, Fp), out_dtype)

    if not tiled:
        kernel = functools.partial(_short_connection_kernel_full, eps=eps,
                                   n_features=F, need_mask=need_mask)

        def call(weight_mode):
            kw = {} if weight_mode is None else {"pipeline_mode": weight_mode}
            grid_spec = pltpu.PrefetchScalarGridSpec(
                num_scalar_prefetch=0,
                grid=(num_i,),
                in_specs=[
                    pl.BlockSpec((tm, Fp), lambda i: (i, 0)),
                    # Constant block index: copied once, never re-fetched.
                    # Single-buffering halves the resident weight footprint
                    # (matters on v7x's 64 MiB/TC VMEM).
                    pl.BlockSpec((Fp, Fp), lambda i: (0, 0), **kw),
                    pl.BlockSpec((1, Fp), lambda i: (0, 0), **kw),
                ],
                out_specs=pl.BlockSpec((tm, Fp), lambda i: (i, 0)),
            )
            return pl.pallas_call(
                kernel, out_shape=out_shape, grid_spec=grid_spec,
                compiler_params=compiler_params_1d, cost_estimate=cost,
            )(x2, wt_folded, b_folded)

        try:
            out = call(pl.Buffered(1))
        except Exception:
            # Fallback for jax versions that reject single-buffer pipeline_mode.
            out = call(None)
    else:
        kernel = functools.partial(_short_connection_kernel_tiled, eps=eps,
                                   n_features=F, need_mask=need_mask, tn=tn)
        grid_spec = pltpu.PrefetchScalarGridSpec(
            num_scalar_prefetch=0,
            grid=(num_i, n_j),
            in_specs=[
                pl.BlockSpec((tm, Fp), lambda i, j: (i, 0)),   # constant over j
                pl.BlockSpec((Fp, tn), lambda i, j: (0, j)),
                pl.BlockSpec((1, tn), lambda i, j: (0, j)),
            ],
            out_specs=pl.BlockSpec((tm, tn), lambda i, j: (i, j)),
            scratch_shapes=[pltpu.VMEM((tm, Fp), jnp.bfloat16)],   # cached LN(x)
        )
        out = pl.pallas_call(
            kernel, out_shape=out_shape, grid_spec=grid_spec,
            compiler_params=compiler_params_2d, cost_estimate=cost,
        )(x2, wt_folded, b_folded)

    if need_mask:
        out = out[:, :F]
    return out.reshape(orig_shape)


def short_connection_forward(x, gamma, beta, w, b, *, eps=1e-6, **kw):
    """Convenience path (folds every call).  Production callers should hoist
    fold_short_connection_params() to parameter-load time."""
    wt_p, b_p = fold_short_connection_params(gamma, beta, w, b)
    return short_connection_layer(x, wt_p, b_p, n_features=w.shape[0], eps=eps, **kw)


# ---------------------------------------------------------------------------
# Pure-JAX reference (matches the PyTorch module in eval mode)
# ---------------------------------------------------------------------------

def reference(x, gamma, beta, w, b, eps=1e-6):
    xf = x.astype(jnp.float32)
    mean = jnp.mean(xf, axis=-1, keepdims=True)
    std = jnp.std(xf, axis=-1, keepdims=True, ddof=1)      # unbiased, like torch
    normed = gamma * (xf - mean) / (std + eps) + beta
    y = normed @ w.T + b
    return (xf + y).astype(x.dtype)


if __name__ == "__main__":
    key = jax.random.PRNGKey(0)
    k1, k2, k3, k4 = jax.random.split(key, 4)

    def init_params(F, kw):
        gamma = jnp.ones((F,), jnp.float32)                # LayerNorm init: ones
        beta = jnp.zeros((F,), jnp.float32)                # LayerNorm init: zeros
        w = 0.05 * jax.random.normal(kw, (F, F), dtype=jnp.float32)
        b = jnp.zeros((F,), jnp.float32)
        return gamma, beta, w, b

    # Tolerance vs the f32 reference: bf16 MXU operands (with gamma folded in)
    # + approx reciprocal give ~1e-3 relative error -- deliberate trade-off.
    TOL = dict(atol=2e-2, rtol=2e-2)

    # Case 1: primary small shape (B=2, S=8, F=32) -- lane-padded, single tile.
    B, S, F = 2, 8, 32
    x = jax.random.normal(k1, (B, S, F), dtype=jnp.float32)
    gamma, beta, w, b = init_params(F, k2)
    wt_p, b_p = fold_short_connection_params(gamma, beta, w, b)   # hoisted fold
    out = jax.block_until_ready(short_connection_layer(x, wt_p, b_p, n_features=F))
    ref = reference(x, gamma, beta, w, b)
    assert out.shape == x.shape
    assert jnp.allclose(out, ref, **TOL), float(jnp.max(jnp.abs(out - ref)))

    # Case 2: multiple row tiles with a non-divisible row count (cdiv grid,
    # OOB rows dropped) and F an exact multiple of 128 (mask-free path).
    B2, S2, F2 = 2, 40, 128
    x2 = jax.random.normal(k3, (B2, S2, F2), dtype=jnp.float32)
    g2, be2, w2, b2 = init_params(F2, k4)
    wt2, bb2 = fold_short_connection_params(g2, be2, w2, b2)
    out2 = jax.block_until_ready(
        short_connection_layer(x2, wt2, bb2, n_features=F2, block_rows=32))
    ref2 = reference(x2, g2, be2, w2, b2)
    assert jnp.allclose(out2, ref2, **TOL), float(jnp.max(jnp.abs(out2 - ref2)))

    # Case 3: forced output-column tiling (tn < Fp) exercising the cached-
    # LayerNorm scratch path on the 2-D grid.
    B3, S3, F3 = 1, 16, 256
    x3 = jax.random.normal(k2, (B3, S3, F3), dtype=jnp.float32)
    g3, be3, w3, b3 = init_params(F3, k1)
    wt3, bb3 = fold_short_connection_params(g3, be3, w3, b3)
    out3 = jax.block_until_ready(
        short_connection_layer(x3, wt3, bb3, n_features=F3,
                               block_rows=16, block_cols=128))
    ref3 = reference(x3, g3, be3, w3, b3)
    assert jnp.allclose(out3, ref3, **TOL), float(jnp.max(jnp.abs(out3 - ref3)))

    print("KERNEL_OK")
</pallas_src>

<mosaic_0001>
module attributes {stable_mosaic.version = 11 : i64} {
  func.func @_short_connection_kernel_full(%arg0: i32, %arg1: memref<16x128xf32, #tpu.memory_space<vmem>>, %arg2: memref<128x128xbf16, #tpu.memory_space<vmem>>, %arg3: memref<1x128xf32, #tpu.memory_space<vmem>>, %arg4: memref<16x128xf32, #tpu.memory_space<vmem>>) attributes {dimension_semantics = [#tpu.dimension_semantics<parallel>], iteration_bounds = array<i64: 1>, scalar_prefetch = 0 : i64, scratch_operands = 0 : i64, tpu.core_type = #tpu.core_type<tc>, window_params = [{transform_indices = @transform_0, window_bounds = array<i64: 16, 128>}, {pipeline_mode = #tpu.pipeline_mode<synchronous>, transform_indices = @transform_1, window_bounds = array<i64: 128, 128>}, {pipeline_mode = #tpu.pipeline_mode<synchronous>, transform_indices = @transform_2, window_bounds = array<i64: 1, 128>}, {transform_indices = @transform_3, window_bounds = array<i64: 16, 128>}]} {
    %c0 = arith.constant 0 : index
    %c0_0 = arith.constant 0 : index
    %0 = vector.load %arg1[%c0, %c0_0] : memref<16x128xf32, #tpu.memory_space<vmem>>, vector<16x128xf32>
    %1 = tpu.iota {dimensions = array<i32: 1>} : vector<16x128xi32>
    %c32_i32 = arith.constant 32 : i32
    %2 = vector.broadcast %c32_i32 : i32 to vector<16x128xi32>
    %3 = arith.cmpi slt, %1, %2 : vector<16x128xi32>
    %4 = arith.extui %3 : vector<16x128xi1> to vector<16x128xi32>
    %5 = arith.sitofp %4 : vector<16x128xi32> to vector<16x128xf32>
    %cst = arith.constant dense<0.000000e+00> : vector<16xf32>
    %6 = vector.multi_reduction <add>, %0, %cst [1] : vector<16x128xf32> to vector<16xf32>
    %7 = vector.shape_cast %6 : vector<16xf32> to vector<16x1xf32>
    %cst_1 = arith.constant 3.125000e-02 : f32
    %8 = vector.broadcast %cst_1 : f32 to vector<16x1xf32>
    %9 = arith.mulf %7, %8 : vector<16x1xf32>
    %10 = vector.broadcast %9 : vector<16x1xf32> to vector<16x128xf32>
    %11 = arith.subf %0, %10 : vector<16x128xf32>
    %12 = arith.mulf %11, %5 : vector<16x128xf32>
    %13 = arith.mulf %12, %12 : vector<16x128xf32>
    %cst_2 = arith.constant dense<0.000000e+00> : vector<16xf32>
    %14 = vector.multi_reduction <add>, %13, %cst_2 [1] : vector<16x128xf32> to vector<16xf32>
    %15 = vector.shape_cast %14 : vector<16xf32> to vector<16x1xf32>
    %cst_3 = arith.constant 0.0322580636 : f32
    %16 = vector.broadcast %cst_3 : f32 to vector<16x1xf32>
    %17 = arith.mulf %15, %16 : vector<16x1xf32>
    %18 = math.sqrt %17 : vector<16x1xf32>
    %cst_4 = arith.constant 9.99999997E-7 : f32
    %19 = vector.broadcast %cst_4 : f32 to vector<16x1xf32>
    %20 = arith.addf %18, %19 : vector<16x1xf32>
    %21 = tpu.reciprocal %20 {approx = true} : vector<16x1xf32> -> vector<16x1xf32>
    %22 = vector.broadcast %21 : vector<16x1xf32> to vector<16x128xf32>
    %23 = arith.mulf %12, %22 : vector<16x128xf32>
    %24 = arith.truncf %23 : vector<16x128xf32> to vector<16x128xbf16>
    %c0_5 = arith.constant 0 : index
    %c0_6 = arith.constant 0 : index
    %25 = vector.load %arg2[%c0_5, %c0_6] : memref<128x128xbf16, #tpu.memory_space<vmem>>, vector<128x128xbf16>
    %cst_7 = arith.constant dense<0.000000e+00> : vector<16x128xf32>
    %26 = tpu.matmul %24, %25, %cst_7 {dimension_numbers = #tpu.dot_dimension_numbers<[1], [0], [0], [1], [0, 0, 1, 1], [], []>} : vector<16x128xbf16>, vector<128x128xbf16>, vector<16x128xf32> -> vector<16x128xf32>
    %c0_8 = arith.constant 0 : index
    %c0_9 = arith.constant 0 : index
    %27 = vector.load %arg3[%c0_8, %c0_9] : memref<1x128xf32, #tpu.memory_space<vmem>>, vector<1x128xf32>
    %28 = vector.broadcast %27 : vector<1x128xf32> to vector<16x128xf32>
    %29 = arith.addf %26, %28 : vector<16x128xf32>
    %30 = arith.addf %0, %29 : vector<16x128xf32>
    %c0_10 = arith.constant 0 : index
    %c0_11 = arith.constant 0 : index
    %31 = vector.load %arg4[%c0_10, %c0_11] : memref<16x128xf32, #tpu.memory_space<vmem>>, vector<16x128xf32>
    tpu.vector_store %arg4[%c0_10, %c0_11], %30 {strides = array<i32>} : memref<16x128xf32, #tpu.memory_space<vmem>>, vector<16x128xf32>,
    return
  }
  func.func @transform_0(%arg0: i32) -> (i32, i32) {
    %c0_i32 = arith.constant 0 : i32
    %c0_i32_0 = arith.constant 0 : i32
    return %arg0, %c0_i32 : i32, i32
  }
  func.func @transform_1(%arg0: i32) -> (i32, i32) {
    %c0_i32 = arith.constant 0 : i32
    %c0_i32_0 = arith.constant 0 : i32
    %c0_i32_1 = arith.constant 0 : i32
    return %c0_i32, %c0_i32_0 : i32, i32
  }
  func.func @transform_2(%arg0: i32) -> (i32, i32) {
    %c0_i32 = arith.constant 0 : i32
    %c0_i32_0 = arith.constant 0 : i32
    %c0_i32_1 = arith.constant 0 : i32
    return %c0_i32, %c0_i32_0 : i32, i32
  }
  func.func @transform_3(%arg0: i32) -> (i32, i32) {
    %c0_i32 = arith.constant 0 : i32
    %c0_i32_0 = arith.constant 0 : i32
    return %arg0, %c0_i32 : i32, i32
  }
}

module attributes {stable_mosaic.version = 11 : i64} {
  func.func @_short_connection_kernel_full(%arg0: i32, %arg1: memref<16x128xf32, #tpu.memory_space<vmem>>, %arg2: memref<128x128xbf16, #tpu.memory_space<vmem>>, %arg3: memref<1x128xf32, #tpu.memory_space<vmem>>, %arg4: memref<16x128xf32, #tpu.memory_space<vmem>>) attributes {dimension_semantics = [#tpu.dimension_semantics<parallel>], iteration_bounds = array<i64: 1>, scalar_prefetch = 0 : i64, scratch_operands = 0 : i64, tpu.core_type = #tpu.core_type<tc>, window_params = [{transform_indices = @transform_0, window_bounds = array<i64: 16, 128>}, {pipeline_mode = #tpu.pipeline_mode<synchronous>, transform_indices = @transform_1, window_bounds = array<i64: 128, 128>}, {pipeline_mode = #tpu.pipeline_mode<synchronous>, transform_indices = @transform_2, window_bounds = array<i64: 1, 128>}, {transform_indices = @transform_3, window_bounds = array<i64: 16, 128>}]} {
    %c0 = arith.constant 0 : index
    %c0_0 = arith.constant 0 : index
    %0 = vector.load %arg1[%c0, %c0_0] : memref<16x128xf32, #tpu.memory_space<vmem>>, vector<16x128xf32>
    %1 = tpu.iota {dimensions = array<i32: 1>} : vector<16x128xi32>
    %c32_i32 = arith.constant 32 : i32
    %2 = vector.broadcast %c32_i32 : i32 to vector<16x128xi32>
    %3 = arith.cmpi slt, %1, %2 : vector<16x128xi32>
    %4 = arith.extui %3 : vector<16x128xi1> to vector<16x128xi32>
    %5 = arith.sitofp %4 : vector<16x128xi32> to vector<16x128xf32>
    %cst = arith.constant dense<0.000000e+00> : vector<16xf32>
    %6 = vector.multi_reduction <add>, %0, %cst [1] : vector<16x128xf32> to vector<16xf32>
    %7 = vector.shape_cast %6 : vector<16xf32> to vector<16x1xf32>
    %cst_1 = arith.constant 3.125000e-02 : f32
    %8 = vector.broadcast %cst_1 : f32 to vector<16x1xf32>
    %9 = arith.mulf %7, %8 : vector<16x1xf32>
    %10 = vector.broadcast %9 : vector<16x1xf32> to vector<16x128xf32>
    %11 = arith.subf %0, %10 : vector<16x128xf32>
    %12 = arith.mulf %11, %5 : vector<16x128xf32>
    %13 = arith.mulf %12, %12 : vector<16x128xf32>
    %cst_2 = arith.constant dense<0.000000e+00> : vector<16xf32>
    %14 = vector.multi_reduction <add>, %13, %cst_2 [1] : vector<16x128xf32> to vector<16xf32>
    %15 = vector.shape_cast %14 : vector<16xf32> to vector<16x1xf32>
    %cst_3 = arith.constant 0.0322580636 : f32
    %16 = vector.broadcast %cst_3 : f32 to vector<16x1xf32>
    %17 = arith.mulf %15, %16 : vector<16x1xf32>
    %18 = math.sqrt %17 : vector<16x1xf32>
    %cst_4 = arith.constant 9.99999997E-7 : f32
    %19 = vector.broadcast %cst_4 : f32 to vector<16x1xf32>
    %20 = arith.addf %18, %19 : vector<16x1xf32>
    %21 = tpu.reciprocal %20 {approx = true} : vector<16x1xf32> -> vector<16x1xf32>
    %22 = vector.broadcast %21 : vector<16x1xf32> to vector<16x128xf32>
    %23 = arith.mulf %12, %22 : vector<16x128xf32>
    %24 = arith.truncf %23 : vector<16x128xf32> to vector<16x128xbf16>
    %c0_5 = arith.constant 0 : index
    %c0_6 = arith.constant 0 : index
    %25 = vector.load %arg2[%c0_5, %c0_6] : memref<128x128xbf16, #tpu.memory_space<vmem>>, vector<128x128xbf16>
    %cst_7 = arith.constant dense<0.000000e+00> : vector<16x128xf32>
    %26 = tpu.matmul %24, %25, %cst_7 {dimension_numbers = #tpu.dot_dimension_numbers<[1], [0], [0], [1], [0, 0, 1, 1], [], []>} : vector<16x128xbf16>, vector<128x128xbf16>, vector<16x128xf32> -> vector<16x128xf32>
    %c0_8 = arith.constant 0 : index
    %c0_9 = arith.constant 0 : index
    %27 = vector.load %arg3[%c0_8, %c0_9] : memref<1x128xf32, #tpu.memory_space<vmem>>, vector<1x128xf32>
    %28 = vector.broadcast %27 : vector<1x128xf32> to vector<16x128xf32>
    %29 = arith.addf %26, %28 : vector<16x128xf32>
    %30 = arith.addf %0, %29 : vector<16x128xf32>
    %c0_10 = arith.constant 0 : index
    %c0_11 = arith.constant 0 : index
    %31 = vector.load %arg4[%c0_10, %c0_11] : memref<16x128xf32, #tpu.memory_space<vmem>>, vector<16x128xf32>
    tpu.vector_store %arg4[%c0_10, %c0_11], %30 {strides = array<i32>} : memref<16x128xf32, #tpu.memory_space<vmem>>, vector<16x128xf32>,
    return
  }
  func.func @transform_0(%arg0: i32) -> (i32, i32) {
    %c0_i32 = arith.constant 0 : i32
    %c0_i32_0 = arith.constant 0 : i32
    return %arg0, %c0_i32 : i32, i32
  }
  func.func @transform_1(%arg0: i32) -> (i32, i32) {
    %c0_i32 = arith.constant 0 : i32
    %c0_i32_0 = arith.constant 0 : i32
    %c0_i32_1 = arith.constant 0 : i32
    return %c0_i32, %c0_i32_0 : i32, i32
  }
  func.func @transform_2(%arg0: i32) -> (i32, i32) {
    %c0_i32 = arith.constant 0 : i32
    %c0_i32_0 = arith.constant 0 : i32
    %c0_i32_1 = arith.constant 0 : i32
    return %c0_i32, %c0_i32_0 : i32, i32
  }
  func.func @transform_3(%arg0: i32) -> (i32, i32) {
    %c0_i32 = arith.constant 0 : i32
    %c0_i32_0 = arith.constant 0 : i32
    return %arg0, %c0_i32 : i32, i32
  }
}

</mosaic_0001>

<bundles_post_ra>
// kernel: tpu_custom_call.1
= control target key start
LH: loop header
LB: loop body
LE: loop exit
PB: predicated region body
PF: predicated region fallthrough
CT: control target
= control target key end

     0   :  { %8 = vsyncpa [#allocation3], 0  ;;  %s401_s0 = inlined_call_operand.hbm [shape: f32[16,128], index: 0, kind: input, shape index: {}]   ;;  %s402_s1 = inlined_call_operand.hbm [shape: bf16[128,128], index: 1, kind: input, shape index: {}]   ;;  %s403_s2 = inlined_call_operand.vmem [shape: f32[1,128], index: 2, kind: input, shape index: {}]   ;;  %s404_s3 = inlined_call_operand.hbm [shape: f32[16,128], index: 3, kind: output, shape index: {}]  }
   0x1   :  { %9 = vsyncpa [#allocation6], 0 }
   0x2   :  { %10 = vsyncpa [#allocation4], 0  ;;  %s15_s14 = sshll.u32 %s401_s0, 4  ;;  %s345_s15 = smov [#allocation2]   ;;  %s16_s14 = int_to_ptr.hbm [resolvable:$true] %s15_s14 }
   0x3   :  { %s17_s16 = sshll.u32 %s345_s15, 4  ;;  %s28_s19 = sshll.u32 %s402_s1, 4  ;;  %s18_s16 = int_to_ptr.vmem [resolvable:$true] %s17_s16  ;;  %s29_s19 = int_to_ptr.hbm [resolvable:$true] %s28_s19 }
   0x4   :  { %s346_s20 = smov 128   ;;  %s347_s21 = smov 8  }
   0x5   :  { %23 = dma.hbm_to_vmem [thread:$0]  %s16_s14, 256, %s18_s16, [#allocation3], %s346_s20, %s346_s20, %s347_s21  }
   0x6   :  { %s348_s22 = smov [#allocation5]   ;;  %s349_s24 = smov 64  }
   0x7   :  { %s30_s23 = sshll.u32 %s348_s22, 4  ;;  %s350_s0 = smov 4   ;;  %s31_s23 = int_to_ptr.vmem [resolvable:$true] %s30_s23 }
   0x8   :  { %36 = dma.hbm_to_vmem [thread:$0]  %s29_s19, 1024, %s31_s23, [#allocation6], %s349_s24, %s349_s24, %s350_s0  }
   0x9   :  { %339 = dma.done.wait [#allocation3], 256  }
   0xa   :  { %340 = vsyncadd [#allocation3], 4294967040 }
   0xb   :  { %341 = dma.done.wait [#allocation6], 1024  }
   0xc   :  { %342 = vsyncadd [#allocation6], 4294966272  ;;  %v382_v0 = vld [vmem:[#allocation2] sm:$0xff]  ;;  %v385_v1 = vld [vmem:[#allocation2 + $0x8] sm:$0xff]  ;;  %v49_v2 = vlaneseq  ;;  %v351_v6 = vmov 0.0   ;;  %s352_s26 = smov [#allocation7]  }
   0xd   :  { %54 = vadd.xlane.f32.xlu0 %v382_v0  ;;  %v249_v16 = vld [vmem:[#allocation5 + $0x38] sm:$0xff]  ;;  %v248_v17 = vld [vmem:[#allocation5 + $0x30] sm:$0xff]  ;;  %v247_v18 = vld [vmem:[#allocation5 + $0x28] sm:$0xff]  ;;  %s193_s27 = sshll.u32 %s352_s26, 4  ;;  %s195_s30 = sshll.u32 %s404_s3, 4  ;;  %s194_s27 = int_to_ptr.vmem [resolvable:$true] %s193_s27  ;;  %s196_s30 = int_to_ptr.hbm [resolvable:$true] %s195_s30 }
   0xe   :  { %v50_v3 = vand.u32 127, %v49_v2  ;;  %171 = vmatpush.bf16.msra.mxu0 %v249_v16  ;;  %v246_v19 = vld [vmem:[#allocation5 + $0x20] sm:$0xff]  ;;  %v245_v20 = vld [vmem:[#allocation5 + $0x18] sm:$0xff]  ;;  %v244_v21 = vld [vmem:[#allocation5 + $0x10] sm:$0xff] }
   0xf   :  { %v243_v24 = vld [vmem:[#allocation5 + $0x8] sm:$0xff]  ;;  %v242_v25 = vld [vmem:[#allocation5] sm:$0xff]  ;;  %v258_v55 = vld [vmem:[%s403_s2] ss:$0 sm:$0xff] }
  0x10   :  { %vm51_vm0 = vcmp.lt.s32.totalorder %v50_v3, 32 }
  0x11   :  { %v209_v7 = vsel %vm51_vm0, 1.0, %v351_v6 }
  0x12   :  { %172 = vmatpush.bf16.msra.mxu0 %v248_v17 }
  0x15   :  { %56 = vadd.xlane.f32.xlu0 %v385_v1 }
  0x16   :  { %173 = vmatpush.bf16.msra.mxu0 %v247_v18 }
  0x1a   :  { %174 = vmatpush.bf16.msra.mxu0 %v246_v19 }
  0x1e   :  { %175 = vmatpush.bf16.msra.mxu0 %v245_v20 }
  0x22   :  { %176 = vmatpush.bf16.msra.mxu0 %v244_v21 }
  0x26   :  { %177 = vmatpush.bf16.msra.mxu0 %v243_v24 }
  0x2a   :  { %178 = vmatpush.bf16.msra.mxu0 %v242_v25 }
  0x80   :  { %v55_v4 = vpop.xlane.xlu0 %54 }
  0x81   :  { %v58_v5 = vmul.f32 0.03125, %v55_v4 }
  0x83   :  { %v60_v8 = vsub.f32 %v382_v0, %v58_v5 }
  0x85   :  { %v62_v9 = vmul.f32 %v209_v7, %v60_v8 }
  0x87   :  { %v64_v10 = vmul.f32 %v62_v9, %v62_v9 }
  0x88   :  { %v57_v11 = vpop.xlane.xlu0 %56 }
  0x89   :  { %v59_v12 = vmul.f32 0.03125, %v57_v11  ;;  %66 = vadd.xlane.f32.xlu1 %v64_v10 }
  0x8b   :  { %v61_v13 = vsub.f32 %v385_v1, %v59_v12 }
  0x8d   :  { %v63_v14 = vmul.f32 %v209_v7, %v61_v13 }
  0x8f   :  { %v65_v15 = vmul.f32 %v63_v14, %v63_v14 }
  0x91   :  { %68 = vadd.xlane.f32.xlu1 %v65_v15 }
  0xfc   :  { %v67_v22 = vpop.xlane.xlu1 %66 }
  0xfd   :  { %v70_v23 = vmul.f32 0.032258064, %v67_v22 }
  0xff   :  { %259 = vrsqrt.f32 %v70_v23  ;;  %vm79_vm1 = vcmp.eq.f32.partialorder %v70_v23, inf  ;;  %v82_v40 = vand.u32 2147483648, %v70_v23  ;;  %vm81_vm2 = vcmp.eq.f32.partialorder %v70_v23, 0.0 }
 0x104   :  { %v69_v26 = vpop.xlane.xlu1 %68 }
 0x105   :  { %v260_v27 = vpop.eup %259  ;;  %v71_v28 = vmul.f32 0.032258064, %v69_v26 }
 0x106   :  { %v73_v29 = vmul.f32 %v260_v27, %v70_v23 }
 0x107   :  { %261 = vrsqrt.f32 %v71_v28  ;;  %vm91_vm3 = vcmp.eq.f32.partialorder %v71_v28, inf  ;;  %v94_v46 = vand.u32 2147483648, %v71_v28  ;;  %vm93_vm4 = vcmp.eq.f32.partialorder %v71_v28, 0.0 }
 0x108   :  { %v74_v30 = vmul.f32 %v260_v27, %v73_v29 }
 0x10a   :  { %v75_v31 = vmul.f32 0.5, %v74_v30 }
 0x10c   :  { %v76_v32 = vsub.f32 1.5, %v75_v31 }
 0x10d   :  { %v262_v33 = vpop.eup %261 }
 0x10e   :  { %v85_v34 = vmul.f32 %v262_v33, %v71_v28  ;;  %v77_v35 = vmul.f32 %v260_v27, %v76_v32 }
 0x110   :  { %v78_v36 = vmul.f32 %v77_v35, %v70_v23  ;;  %v86_v37 = vmul.f32 %v262_v33, %v85_v34 }
 0x112   :  { %v80_v38 = vsel %vm79_vm1, %v70_v23, %v78_v36  ;;  %v87_v39 = vmul.f32 0.5, %v86_v37 }
 0x113   :  { %v83_v42 = vsel %vm81_vm2, %v82_v40, %v80_v38 }
 0x114   :  { %v88_v41 = vsub.f32 1.5, %v87_v39  ;;  %v96_v45 = vadd.f32 1e-06, %v83_v42 }
 0x116   :  { %v89_v43 = vmul.f32 %v262_v33, %v88_v41  ;;  %263 = vrcp.f32 %v96_v45 }
 0x118   :  { %v90_v44 = vmul.f32 %v89_v43, %v71_v28 }
 0x11a   :  { %v92_v47 = vsel %vm91_vm3, %v71_v28, %v90_v44 }
 0x11b   :  { %v95_v48 = vsel %vm93_vm4, %v94_v46, %v92_v47 }
 0x11c   :  { %v97_v49 = vadd.f32 1e-06, %v95_v48  ;;  %v264_v50 = vpop.eup %263 }
 0x11d   :  { %v100_v52 = vmul.f32 %v264_v50, %v62_v9 }
 0x11e   :  { %265 = vrcp.f32 %v97_v49 }
 0x124   :  { %v266_v51 = vpop.eup %265 }
 0x125   :  { %v101_v53 = vmul.f32 %v266_v51, %v63_v14 }
 0x127   :  { %v102_v54 = vpack.c.bf16 %v101_v53, %v100_v52 }
 0x129   :  { %179 = vmatmul.bf16.vlgmr.msra.gmra.mxu0 %v102_v54 }
 0x1a6   :  { %v180_v56 = vpop.f32.mrf.mxu0 }
 0x1a7   :  { %v181_v57 = vadd.f32 %v258_v55, %v180_v56 }
 0x1a9   :  { %v185_v58 = vadd.f32 %v181_v57, %v382_v0 }
 0x1ab   :  { %187 = vst [vmem:[#allocation7] sm:$0xff] %v185_v58 }
 0x1ae   :  { %v182_v59 = vpop.f32.mrf.mxu0 }
 0x1af   :  { %v183_v60 = vadd.f32 %v258_v55, %v182_v59 }
 0x1b1   :  { %v186_v61 = vadd.f32 %v183_v60, %v385_v1 }
 0x1b3   :  { %188 = vst [vmem:[#allocation7 + $0x8] sm:$0xff] %v186_v61 }
 0x1b4   :  { %201 = dma.vmem_to_hbm [thread:$0]  %s194_s27, 256, %s196_s30, [#allocation4], %s346_s20, %s346_s20, %s347_s21  }
 0x1b5   :  { %343 = dma.done.wait [#allocation4], 256  }
 0x1b6   :  { %344 = vsyncadd [#allocation4], 4294967040 }
 0x1b7   :  { %206 = vsyncpa [#allocation3], 1 }
 0x1b8   :  { %207 = vsyncpa [#allocation6], 1 }
 0x1b9   :  { %208 = vsyncpa [#allocation4], 1 }

// kernel: tpu_custom_call.1
= control target key start
LH: loop header
LB: loop body
LE: loop exit
PB: predicated region body
PF: predicated region fallthrough
CT: control target
= control target key end

     0   :  { %8 = vsyncpa [#allocation3], 0  ;;  %s401_s0 = inlined_call_operand.hbm [shape: f32[16,128], index: 0, kind: input, shape index: {}]   ;;  %s402_s1 = inlined_call_operand.hbm [shape: bf16[128,128], index: 1, kind: input, shape index: {}]   ;;  %s403_s2 = inlined_call_operand.vmem [shape: f32[1,128], index: 2, kind: input, shape index: {}]   ;;  %s404_s3 = inlined_call_operand.hbm [shape: f32[16,128], index: 3, kind: output, shape index: {}]  }
   0x1   :  { %9 = vsyncpa [#allocation6], 0 }
   0x2   :  { %10 = vsyncpa [#allocation4], 0  ;;  %s15_s14 = sshll.u32 %s401_s0, 4  ;;  %s345_s15 = smov [#allocation2]   ;;  %s16_s14 = int_to_ptr.hbm [resolvable:$true] %s15_s14 }
   0x3   :  { %s17_s16 = sshll.u32 %s345_s15, 4  ;;  %s28_s19 = sshll.u32 %s402_s1, 4  ;;  %s18_s16 = int_to_ptr.vmem [resolvable:$true] %s17_s16  ;;  %s29_s19 = int_to_ptr.hbm [resolvable:$true] %s28_s19 }
   0x4   :  { %s346_s20 = smov 128   ;;  %s347_s21 = smov 8  }
   0x5   :  { %23 = dma.hbm_to_vmem [thread:$0]  %s16_s14, 256, %s18_s16, [#allocation3], %s346_s20, %s346_s20, %s347_s21  }
   0x6   :  { %s348_s22 = smov [#allocation5]   ;;  %s349_s24 = smov 64  }
   0x7   :  { %s30_s23 = sshll.u32 %s348_s22, 4  ;;  %s350_s0 = smov 4   ;;  %s31_s23 = int_to_ptr.vmem [resolvable:$true] %s30_s23 }
   0x8   :  { %36 = dma.hbm_to_vmem [thread:$0]  %s29_s19, 1024, %s31_s23, [#allocation6], %s349_s24, %s349_s24, %s350_s0  }
   0x9   :  { %339 = dma.done.wait [#allocation3], 256  }
   0xa   :  { %340 = vsyncadd [#allocation3], 4294967040 }
   0xb   :  { %341 = dma.done.wait [#allocation6], 1024  }
   0xc   :  { %342 = vsyncadd [#allocation6], 4294966272  ;;  %v382_v0 = vld [vmem:[#allocation2] sm:$0xff]  ;;  %v385_v1 = vld [vmem:[#allocation2 + $0x8] sm:$0xff]  ;;  %v49_v2 = vlaneseq  ;;  %v351_v6 = vmov 0.0   ;;  %s352_s26 = smov [#allocation7]  }
   0xd   :  { %54 = vadd.xlane.f32.xlu0 %v382_v0  ;;  %v249_v16 = vld [vmem:[#allocation5 + $0x38] sm:$0xff]  ;;  %v248_v17 = vld [vmem:[#allocation5 + $0x30] sm:$0xff]  ;;  %v247_v18 = vld [vmem:[#allocation5 + $0x28] sm:$0xff]  ;;  %s193_s27 = sshll.u32 %s352_s26, 4  ;;  %s195_s30 = sshll.u32 %s404_s3, 4  ;;  %s194_s27 = int_to_ptr.vmem [resolvable:$true] %s193_s27  ;;  %s196_s30 = int_to_ptr.hbm [resolvable:$true] %s195_s30 }
   0xe   :  { %v50_v3 = vand.u32 127, %v49_v2  ;;  %171 = vmatpush.bf16.msra.mxu0 %v249_v16  ;;  %v246_v19 = vld [vmem:[#allocation5 + $0x20] sm:$0xff]  ;;  %v245_v20 = vld [vmem:[#allocation5 + $0x18] sm:$0xff]  ;;  %v244_v21 = vld [vmem:[#allocation5 + $0x10] sm:$0xff] }
   0xf   :  { %v243_v24 = vld [vmem:[#allocation5 + $0x8] sm:$0xff]  ;;  %v242_v25 = vld [vmem:[#allocation5] sm:$0xff]  ;;  %v258_v55 = vld [vmem:[%s403_s2] ss:$0 sm:$0xff] }
  0x10   :  { %vm51_vm0 = vcmp.lt.s32.totalorder %v50_v3, 32 }
  0x11   :  { %v209_v7 = vsel %vm51_vm0, 1.0, %v351_v6 }
  0x12   :  { %172 = vmatpush.bf16.msra.mxu0 %v248_v17 }
  0x15   :  { %56 = vadd.xlane.f32.xlu0 %v385_v1 }
  0x16   :  { %173 = vmatpush.bf16.msra.mxu0 %v247_v18 }
  0x1a   :  { %174 = vmatpush.bf16.msra.mxu0 %v246_v19 }
  0x1e   :  { %175 = vmatpush.bf16.msra.mxu0 %v245_v20 }
  0x22   :  { %176 = vmatpush.bf16.msra.mxu0 %v244_v21 }
  0x26   :  { %177 = vmatpush.bf16.msra.mxu0 %v243_v24 }
  0x2a   :  { %178 = vmatpush.bf16.msra.mxu0 %v242_v25 }
  0x80   :  { %v55_v4 = vpop.xlane.xlu0 %54 }
  0x81   :  { %v58_v5 = vmul.f32 0.03125, %v55_v4 }
  0x83   :  { %v60_v8 = vsub.f32 %v382_v0, %v58_v5 }
  0x85   :  { %v62_v9 = vmul.f32 %v209_v7, %v60_v8 }
  0x87   :  { %v64_v10 = vmul.f32 %v62_v9, %v62_v9 }
  0x88   :  { %v57_v11 = vpop.xlane.xlu0 %56 }
  0x89   :  { %v59_v12 = vmul.f32 0.03125, %v57_v11  ;;  %66 = vadd.xlane.f32.xlu1 %v64_v10 }
  0x8b   :  { %v61_v13 = vsub.f32 %v385_v1, %v59_v12 }
  0x8d   :  { %v63_v14 = vmul.f32 %v209_v7, %v61_v13 }
  0x8f   :  { %v65_v15 = vmul.f32 %v63_v14, %v63_v14 }
  0x91   :  { %68 = vadd.xlane.f32.xlu1 %v65_v15 }
  0xfc   :  { %v67_v22 = vpop.xlane.xlu1 %66 }
  0xfd   :  { %v70_v23 = vmul.f32 0.032258064, %v67_v22 }
  0xff   :  { %259 = vrsqrt.f32 %v70_v23  ;;  %vm79_vm1 = vcmp.eq.f32.partialorder %v70_v23, inf  ;;  %v82_v40 = vand.u32 2147483648, %v70_v23  ;;  %vm81_vm2 = vcmp.eq.f32.partialorder %v70_v23, 0.0 }
 0x104   :  { %v69_v26 = vpop.xlane.xlu1 %68 }
 0x105   :  { %v260_v27 = vpop.eup %259  ;;  %v71_v28 = vmul.f32 0.032258064, %v69_v26 }
 0x106   :  { %v73_v29 = vmul.f32 %v260_v27, %v70_v23 }
 0x107   :  { %261 = vrsqrt.f32 %v71_v28  ;;  %vm91_vm3 = vcmp.eq.f32.partialorder %v71_v28, inf  ;;  %v94_v46 = vand.u32 2147483648, %v71_v28  ;;  %vm93_vm4 = vcmp.eq.f32.partialorder %v71_v28, 0.0 }
 0x108   :  { %v74_v30 = vmul.f32 %v260_v27, %v73_v29 }
 0x10a   :  { %v75_v31 = vmul.f32 0.5, %v74_v30 }
 0x10c   :  { %v76_v32 = vsub.f32 1.5, %v75_v31 }
 0x10d   :  { %v262_v33 = vpop.eup %261 }
 0x10e   :  { %v85_v34 = vmul.f32 %v262_v33, %v71_v28  ;;  %v77_v35 = vmul.f32 %v260_v27, %v76_v32 }
 0x110   :  { %v78_v36 = vmul.f32 %v77_v35, %v70_v23  ;;  %v86_v37 = vmul.f32 %v262_v33, %v85_v34 }
 0x112   :  { %v80_v38 = vsel %vm79_vm1, %v70_v23, %v78_v36  ;;  %v87_v39 = vmul.f32 0.5, %v86_v37 }
 0x113   :  { %v83_v42 = vsel %vm81_vm2, %v82_v40, %v80_v38 }
 0x114   :  { %v88_v41 = vsub.f32 1.5, %v87_v39  ;;  %v96_v45 = vadd.f32 1e-06, %v83_v42 }
 0x116   :  { %v89_v43 = vmul.f32 %v262_v33, %v88_v41  ;;  %263 = vrcp.f32 %v96_v45 }
 0x118   :  { %v90_v44 = vmul.f32 %v89_v43, %v71_v28 }
 0x11a   :  { %v92_v47 = vsel %vm91_vm3, %v71_v28, %v90_v44 }
 0x11b   :  { %v95_v48 = vsel %vm93_vm4, %v94_v46, %v92_v47 }
 0x11c   :  { %v97_v49 = vadd.f32 1e-06, %v95_v48  ;;  %v264_v50 = vpop.eup %263 }
 0x11d   :  { %v100_v52 = vmul.f32 %v264_v50, %v62_v9 }
 0x11e   :  { %265 = vrcp.f32 %v97_v49 }
 0x124   :  { %v266_v51 = vpop.eup %265 }
 0x125   :  { %v101_v53 = vmul.f32 %v266_v51, %v63_v14 }
 0x127   :  { %v102_v54 = vpack.c.bf16 %v101_v53, %v100_v52 }
 0x129   :  { %179 = vmatmul.bf16.vlgmr.msra.gmra.mxu0 %v102_v54 }
 0x1a6   :  { %v180_v56 = vpop.f32.mrf.mxu0 }
 0x1a7   :  { %v181_v57 = vadd.f32 %v258_v55, %v180_v56 }
 0x1a9   :  { %v185_v58 = vadd.f32 %v181_v57, %v382_v0 }
 0x1ab   :  { %187 = vst [vmem:[#allocation7] sm:$0xff] %v185_v58 }
 0x1ae   :  { %v182_v59 = vpop.f32.mrf.mxu0 }
 0x1af   :  { %v183_v60 = vadd.f32 %v258_v55, %v182_v59 }
 0x1b1   :  { %v186_v61 = vadd.f32 %v183_v60, %v385_v1 }
 0x1b3   :  { %188 = vst [vmem:[#allocation7 + $0x8] sm:$0xff] %v186_v61 }
 0x1b4   :  { %201 = dma.vmem_to_hbm [thread:$0]  %s194_s27, 256, %s196_s30, [#allocation4], %s346_s20, %s346_s20, %s347_s21  }
 0x1b5   :  { %343 = dma.done.wait [#allocation4], 256  }
 0x1b6   :  { %344 = vsyncadd [#allocation4], 4294967040 }
 0x1b7   :  { %206 = vsyncpa [#allocation3], 1 }
 0x1b8   :  { %207 = vsyncpa [#allocation6], 1 }
 0x1b9   :  { %208 = vsyncpa [#allocation4], 1 }

</bundles_post_ra>
